<compile_context>
chip_gen: v7x
topology: tpu7x:2x2x1
jax: 0.10.0
libtpu: 0.0.40
codegen_flags: <defaults>
</compile_context>

<pallas_src>
import functools
import jax
import jax.numpy as jnp
from jax.experimental import pallas as pl
from jax.experimental.pallas import tpu as pltpu


# ---------------------------------------------------------------------------
# Pallas kernels: one long-K matmul per M tile, fused bias + activation
# ---------------------------------------------------------------------------
def _mm_kernel(x_ref, w_ref, b_ref, o_ref, *, act):
    acc = jnp.dot(x_ref[...], w_ref[...], preferred_element_type=jnp.float32)
    out = acc + b_ref[...]                       # bias in f32
    if act == "lrelu":                           # LeakyReLU(0.2)
        out = jnp.where(out >= 0.0, out, 0.2 * out)
    elif act == "tanh":                          # fused nn.Tanh()
        out = jnp.tanh(out)
    o_ref[...] = out.astype(o_ref.dtype)


def _mm_blend_kernel(x_ref, w_ref, b_ref, o1_ref, o_ref, *, p):
    # Fractional-stage fade-in: tanh(out_1*(1-p) + (x@w + b)*p), fully fused.
    acc = jnp.dot(x_ref[...], w_ref[...], preferred_element_type=jnp.float32)
    out2 = acc + b_ref[...]
    out = jnp.tanh(o1_ref[...] * (1.0 - p) + out2 * p)
    o_ref[...] = out.astype(o_ref.dtype)


def _round_up(x, m):
    return (x + m - 1) // m * m


def _pick_tile(dim, candidates):
    for c in candidates:
        if dim >= c and dim % c == 0:
            return c
    return dim


def fused_matmul(x, w_mat, bias, act, extra=None, p=None):
    """x: (M, K), w_mat: (K, N), bias: (N,) -> (M, N).

    bf16 inputs on the MXU, f32 accumulation.  Weight/bias are full-K/full-N
    VMEM-resident (largest PGGAN panel is 4608x512 bf16 ~ 4.5 MiB); only M is
    tiled by the grid.  Output is bf16 for inter-layer activations ("lrelu")
    and f32 at module boundaries (tanh / blend / plain conv).
    """
    M, K = x.shape
    K2, N = w_mat.shape
    assert K == K2

    Mp = _round_up(M, 16)            # bf16 vreg packs (16, 128) sublanes
    Kp = _round_up(K, 128)
    Np = _round_up(N, 128)           # lane-dense output even for nc=3 to_rgb

    xb = x.astype(jnp.bfloat16)
    wb = w_mat.astype(jnp.bfloat16)
    if (Mp, Kp) != (M, K):
        xb = jnp.pad(xb, ((0, Mp - M), (0, Kp - K)))
    if (Kp, Np) != (K, N):
        wb = jnp.pad(wb, ((0, Kp - K), (0, Np - N)))
    b2 = bias.astype(jnp.float32).reshape(1, N)
    if Np != N:
        b2 = jnp.pad(b2, ((0, 0), (0, Np - N)))

    # TODO(synk): bump tm to 512 on v6e (128 MiB VMEM) via pltpu.get_tpu_info().
    tm = _pick_tile(Mp, (256, 128, 64, 32, 16))
    grid = (Mp // tm,)

    out_dtype = jnp.bfloat16 if act == "lrelu" else jnp.float32

    in_specs = [
        pl.BlockSpec((tm, Kp), lambda i: (i, 0)),    # LHS: M-tiled, full K
        pl.BlockSpec((Kp, Np), lambda i: (0, 0)),    # weight panel: VMEM-resident
        pl.BlockSpec((1, Np), lambda i: (0, 0)),     # bias
    ]
    args = [xb, wb, b2]

    if act == "blend_tanh":
        e = extra.astype(jnp.float32)
        if e.shape != (Mp, Np):
            e = jnp.pad(e, ((0, Mp - e.shape[0]), (0, Np - e.shape[1])))
        in_specs.append(pl.BlockSpec((tm, Np), lambda i: (i, 0)))
        args.append(e)
        kernel = functools.partial(_mm_blend_kernel, p=float(p))
    else:
        kernel = functools.partial(_mm_kernel, act=act)

    out = pl.pallas_call(
        kernel,
        out_shape=jax.ShapeDtypeStruct((Mp, Np), out_dtype),
        grid_spec=pltpu.PrefetchScalarGridSpec(
            num_scalar_prefetch=0,
            grid=grid,
            in_specs=in_specs,
            out_specs=pl.BlockSpec((tm, Np), lambda i: (i, 0)),
        ),
        compiler_params=pltpu.CompilerParams(
            dimension_semantics=("parallel",),
            # ~15-18 MiB actually used with tm=256 / K=4608 / N=512; fits the
            # 32 MiB scoped budget on v5e/v6e/v7x (v7x physical is 64 MiB).
            vmem_limit_bytes=32 * 1024 * 1024,
        ),
    )(*args)

    if (Mp, Np) != (M, N):
        out = out[:M, :N]
    return out


# ---------------------------------------------------------------------------
# Glue: NHWC im2col (bf16), conv wrapper, nearest-neighbor 2x upsample (bf16)
# ---------------------------------------------------------------------------
# TODO(synk): fuse im2col / the 2x nearest upsample gather into the kernel's
# index_map (shifted-window LHS reads per (kh,kw) tap) instead of materializing
# bf16 patches in HBM -- remaining HBM win for the large-resolution stages.
def im2col_nhwc(x, ks, pad):
    B, H, W, C = x.shape
    if pad:
        x = jnp.pad(x, ((0, 0), (pad, pad), (pad, pad), (0, 0)))
    Ho = H + 2 * pad - ks + 1
    Wo = W + 2 * pad - ks + 1
    if ks == 1:
        p = x
    else:
        cols = [x[:, i:i + Ho, j:j + Wo, :]
                for i in range(ks) for j in range(ks)]      # (kh, kw) order
        p = jnp.concatenate(cols, axis=-1)                  # (B,Ho,Wo,ks*ks*C)
    return p.reshape(B * Ho * Wo, ks * ks * C), Ho, Wo


def conv2d_nhwc(x, weight, bias, ks, pad, act, extra=None, p=None):
    """Conv2d(stride=1, padding=pad) [+ fused activation]; NHWC activations, OIHW weight."""
    B = x.shape[0]
    Cout, Cin = weight.shape[0], weight.shape[1]
    patches, Ho, Wo = im2col_nhwc(x, ks, pad)
    # (Cout,Cin,kh,kw) -> (kh,kw,Cin,Cout) -> (kh*kw*Cin, Cout); matches patch column order.
    w_mat = jnp.transpose(weight, (2, 3, 1, 0)).reshape(ks * ks * Cin, Cout)
    if extra is not None:
        extra = extra.reshape(-1, extra.shape[-1])
    out = fused_matmul(patches, w_mat, bias, act, extra=extra, p=p)
    return out.reshape(B, Ho, Wo, Cout)


def upsample2x_nhwc(x):   # F.interpolate(scale_factor=2, mode='nearest'), stays bf16
    return jnp.repeat(jnp.repeat(x, 2, axis=1), 2, axis=2)


# ---------------------------------------------------------------------------
# Parameter construction (deterministic, mirrors PGGAN_G.__init__ shapes)
# ---------------------------------------------------------------------------
NGFS = {8: [512, 512], 16: [512, 512, 512], 32: [512, 512, 512, 512],
        64: [512, 512, 512, 512, 256], 128: [512, 512, 512, 512, 256, 128]}


def _conv_params(key, ni, no, ks):
    kw, kb = jax.random.split(key)
    scale = (2.0 / (ni * ks * ks)) ** 0.5            # keeps activations O(1)
    w = jax.random.normal(kw, (no, ni, ks, ks), jnp.float32) * scale
    b = jax.random.normal(kb, (no,), jnp.float32) * 0.01
    return w, b


def init_pggan_g(key, sz, nz, nc):
    cur_ngf = NGFS[sz]
    keys = iter(jax.random.split(key, 4 * len(cur_ngf) + 8))
    blocks, to_blocks = [], []
    prev = cur_ngf[0]
    # block 0: ScaledConvBlock(nz, prev, 4, 1, 3) ; ScaledConvBlock(prev, prev, 3, 1, 1)
    blocks.append([(*_conv_params(next(keys), nz, prev, 4), 4, 3),
                   (*_conv_params(next(keys), prev, prev, 3), 3, 1)])
    for dim in cur_ngf[1:]:
        blocks.append([(*_conv_params(next(keys), prev, dim, 3), 3, 1),
                       (*_conv_params(next(keys), dim, dim, 3), 3, 1)])
        prev = dim
    for dim in cur_ngf:
        to_blocks.append((*_conv_params(next(keys), dim, nc, 1), 1, 0))
    return {"blocks": blocks, "to_blocks": to_blocks}


# ---------------------------------------------------------------------------
# Forward pass (mirrors PGGAN_G.forward; `stage` must be a static Python scalar)
# ---------------------------------------------------------------------------
def _run_block(block_params, x):
    for (w, b, ks, pad) in block_params:
        x = conv2d_nhwc(x, w, b, ks, pad, act="lrelu")   # bf16 activations out
    return x


def pggan_g_forward(params, x, stage):
    stage_int = int(stage)
    stage_is_int = (stage == stage_int)
    out = jnp.transpose(x, (0, 2, 3, 1)).astype(jnp.bfloat16)   # NCHW -> NHWC once
    if stage_is_int:
        for i in range(stage_int):
            out = _run_block(params["blocks"][i], out)
            out = upsample2x_nhwc(out)
        out = _run_block(params["blocks"][stage_int], out)
        w, b, ks, pad = params["to_blocks"][stage_int]
        out = conv2d_nhwc(out, w, b, ks, pad, act="tanh")        # tanh fused
    else:
        p = float(stage - stage_int)
        for i in range(stage_int + 1):
            out = _run_block(params["blocks"][i], out)
            out = upsample2x_nhwc(out)
        w1, b1, ks1, pad1 = params["to_blocks"][stage_int]
        out_1 = conv2d_nhwc(out, w1, b1, ks1, pad1, act=None)    # f32, un-activated
        out_2 = _run_block(params["blocks"][stage_int + 1], out)
        w2, b2, ks2, pad2 = params["to_blocks"][stage_int + 1]
        # fade-in blend + tanh fused into this kernel's epilogue
        out = conv2d_nhwc(out_2, w2, b2, ks2, pad2, act="blend_tanh",
                          extra=out_1, p=p)
    return jnp.transpose(out, (0, 3, 1, 2)).astype(jnp.float32)  # NHWC -> NCHW once


# ---------------------------------------------------------------------------
# Reference (lax.conv with the same bf16-storage / f32-accumulate policy)
# ---------------------------------------------------------------------------
def _ref_conv(x, w, b, pad):
    out = jax.lax.conv_general_dilated(
        x.astype(jnp.bfloat16), w.astype(jnp.bfloat16), (1, 1),
        [(pad, pad), (pad, pad)],
        dimension_numbers=("NCHW", "OIHW", "NCHW"),
        preferred_element_type=jnp.float32)
    return out + b.reshape(1, -1, 1, 1)


def _ref_block(block_params, x):
    for (w, b, ks, pad) in block_params:
        x = _ref_conv(x, w, b, pad)
        x = jnp.where(x >= 0.0, x, 0.2 * x).astype(jnp.bfloat16)  # bf16 storage
    return x


def _ref_upsample(x):
    return jnp.repeat(jnp.repeat(x, 2, axis=2), 2, axis=3)


def _ref_forward(params, x, stage):
    stage_int = int(stage)
    out = x
    if stage == stage_int:
        for i in range(stage_int):
            out = _ref_block(params["blocks"][i], out)
            out = _ref_upsample(out)
        out = _ref_block(params["blocks"][stage_int], out)
        w, b, _, pad = params["to_blocks"][stage_int]
        out = _ref_conv(out, w, b, pad)
    else:
        p = stage - stage_int
        for i in range(stage_int + 1):
            out = _ref_block(params["blocks"][i], out)
            out = _ref_upsample(out)
        w1, b1, _, pad1 = params["to_blocks"][stage_int]
        out_1 = _ref_conv(out, w1, b1, pad1)
        out_2 = _ref_block(params["blocks"][stage_int + 1], out)
        w2, b2, _, pad2 = params["to_blocks"][stage_int + 1]
        out_2 = _ref_conv(out_2, w2, b2, pad2)
        out = out_1 * (1.0 - p) + out_2 * p
    return jnp.tanh(out)


if __name__ == "__main__":
    key = jax.random.PRNGKey(0)
    sz, nz, nc = 8, 32, 3          # smallest PGGAN config: ngfs = [512, 512]
    B = 2

    kparams, kx = jax.random.split(key)
    params = init_pggan_g(kparams, sz, nz, nc)
    x = jax.random.normal(kx, (B, nz, 1, 1), jnp.float32)    # latent (NCHW)

    # bf16-pipeline tolerance (bf16 storage + MXU dot + EUP tanh vs lax.conv)
    TOL = 5e-2

    # integer-stage path: 4x4 block -> upsample -> 8x8 block -> to_rgb -> tanh
    stage = 1
    out = jax.block_until_ready(pggan_g_forward(params, x, stage))
    assert out.shape == (B, nc, 8, 8), out.shape
    ref = jax.block_until_ready(_ref_forward(params, x, stage))
    err = float(jnp.max(jnp.abs(out - ref)))
    assert err < TOL, f"integer-stage mismatch vs reference: {err}"

    # fractional-stage path (fade-in blend between to_blocks[0] and to_blocks[1])
    stage_f = 0.5
    out_f = jax.block_until_ready(pggan_g_forward(params, x, stage_f))
    assert out_f.shape == (B, nc, 8, 8), out_f.shape
    ref_f = jax.block_until_ready(_ref_forward(params, x, stage_f))
    err_f = float(jnp.max(jnp.abs(out_f - ref_f)))
    assert err_f < TOL, f"fractional-stage mismatch vs reference: {err_f}"

    print("KERNEL_OK")
</pallas_src>

<mosaic_0001>
module attributes {stable_mosaic.version = 11 : i64} {
  func.func @_mm_kernel(%arg0: i32, %arg1: memref<32x512xbf16, #tpu.memory_space<vmem>>, %arg2: memref<512x512xbf16, #tpu.memory_space<vmem>>, %arg3: memref<1x512xf32, #tpu.memory_space<vmem>>, %arg4: memref<32x512xbf16, #tpu.memory_space<vmem>>) attributes {dimension_semantics = [#tpu.dimension_semantics<parallel>], iteration_bounds = array<i64: 1>, scalar_prefetch = 0 : i64, scratch_operands = 0 : i64, tpu.core_type = #tpu.core_type<tc>, window_params = [{transform_indices = @transform_0, window_bounds = array<i64: 32, 512>}, {pipeline_mode = #tpu.pipeline_mode<synchronous>, transform_indices = @transform_1, window_bounds = array<i64: 512, 512>}, {pipeline_mode = #tpu.pipeline_mode<synchronous>, transform_indices = @transform_2, window_bounds = array<i64: 1, 512>}, {transform_indices = @transform_3, window_bounds = array<i64: 32, 512>}]} {
    %c0 = arith.constant 0 : index
    %c0_0 = arith.constant 0 : index
    %0 = vector.load %arg1[%c0, %c0_0] : memref<32x512xbf16, #tpu.memory_space<vmem>>, vector<32x512xbf16>
    %c0_1 = arith.constant 0 : index
    %c0_2 = arith.constant 0 : index
    %1 = vector.load %arg2[%c0_1, %c0_2] : memref<512x512xbf16, #tpu.memory_space<vmem>>, vector<512x512xbf16>
    %cst = arith.constant dense<0.000000e+00> : vector<32x512xf32>
    %2 = tpu.matmul %0, %1, %cst {dimension_numbers = #tpu.dot_dimension_numbers<[1], [0], [0], [1], [0, 0, 1, 1], [], []>} : vector<32x512xbf16>, vector<512x512xbf16>, vector<32x512xf32> -> vector<32x512xf32>
    %c0_3 = arith.constant 0 : index
    %c0_4 = arith.constant 0 : index
    %3 = vector.load %arg3[%c0_3, %c0_4] : memref<1x512xf32, #tpu.memory_space<vmem>>, vector<1x512xf32>
    %4 = vector.broadcast %3 : vector<1x512xf32> to vector<32x512xf32>
    %5 = arith.addf %2, %4 : vector<32x512xf32>
    %cst_5 = arith.constant 0.000000e+00 : f32
    %6 = vector.broadcast %cst_5 : f32 to vector<32x512xf32>
    %7 = arith.cmpf oge, %5, %6 : vector<32x512xf32>
    %cst_6 = arith.constant 2.000000e-01 : f32
    %8 = vector.broadcast %cst_6 : f32 to vector<32x512xf32>
    %9 = arith.mulf %8, %5 : vector<32x512xf32>
    %10 = arith.select %7, %5, %9 : vector<32x512xi1>, vector<32x512xf32>
    %11 = arith.truncf %10 : vector<32x512xf32> to vector<32x512xbf16>
    %c0_7 = arith.constant 0 : index
    %c0_8 = arith.constant 0 : index
    %12 = vector.load %arg4[%c0_7, %c0_8] : memref<32x512xbf16, #tpu.memory_space<vmem>>, vector<32x512xbf16>
    tpu.vector_store %arg4[%c0_7, %c0_8], %11 {strides = array<i32>} : memref<32x512xbf16, #tpu.memory_space<vmem>>, vector<32x512xbf16>,
    return
  }
  func.func @transform_0(%arg0: i32) -> (i32, i32) {
    %c0_i32 = arith.constant 0 : i32
    %c0_i32_0 = arith.constant 0 : i32
    return %arg0, %c0_i32 : i32, i32
  }
  func.func @transform_1(%arg0: i32) -> (i32, i32) {
    %c0_i32 = arith.constant 0 : i32
    %c0_i32_0 = arith.constant 0 : i32
    %c0_i32_1 = arith.constant 0 : i32
    return %c0_i32, %c0_i32_0 : i32, i32
  }
  func.func @transform_2(%arg0: i32) -> (i32, i32) {
    %c0_i32 = arith.constant 0 : i32
    %c0_i32_0 = arith.constant 0 : i32
    %c0_i32_1 = arith.constant 0 : i32
    return %c0_i32, %c0_i32_0 : i32, i32
  }
  func.func @transform_3(%arg0: i32) -> (i32, i32) {
    %c0_i32 = arith.constant 0 : i32
    %c0_i32_0 = arith.constant 0 : i32
    return %arg0, %c0_i32 : i32, i32
  }
}

</mosaic_0001>

<bundles_post_ra>
// kernel: tpu_custom_call.1
= control target key start
LH: loop header
LB: loop body
LE: loop exit
PB: predicated region body
PF: predicated region fallthrough
CT: control target
= control target key end

     0   :  { %8 = vsyncpa [#allocation3], 0  ;;  %s1777_s0 = inlined_call_operand.hbm [shape: bf16[32,512], index: 0, kind: input, shape index: {}]   ;;  %s1778_s1 = inlined_call_operand.hbm [shape: bf16[512,512], index: 1, kind: input, shape index: {}]   ;;  %s1779_s2 = inlined_call_operand.vmem [shape: f32[1,512], index: 2, kind: input, shape index: {}]   ;;  %s1780_s3 = inlined_call_operand.hbm [shape: bf16[32,512], index: 3, kind: output, shape index: {}]  }
   0x1   :  { %9 = vsyncpa [#allocation6], 0 }
   0x2   :  { %10 = vsyncpa [#allocation4], 0  ;;  %s1680_s12 = smov [#allocation2]   ;;  %s1608_s16 = scalar_lea.hbm %s1777_s0, 1024 }
   0x3   :  { %s16_s13 = sshll.u32 %s1680_s12, 4  ;;  %p1609_p0 = scmp.ne.s32.totalorder %s1777_s0, %s1608_s16  ;;  %s17_s13 = int_to_ptr.vmem [resolvable:$true] %s16_s13 }
   0x4   :  { %p1612_p1 = scmp.lt.u32.totalorder %s1608_s16, %s1777_s0 }
   0x6   :  { %p1614_p2 = pnand %p1612_p1, %p1609_p0 }
   0x8   :  { %1617 = shalt.err (!%p1614_p2)
}
   0x9   :  { %s1618_s21 = scalar_lea.vmem %s17_s13, 1024  ;;  %p1623_p4 = scmp.lt.s32.totalorder %s17_s13, %s17_s13 }
   0xa   :  { %p1619_p3 = scmp.ne.s32.totalorder %s17_s13, %s1618_s21  ;;  %p1624_p5 = scmp.lt.s32.totalorder %s1618_s21, %s1618_s21 }
   0xc   :  { %p1625_p6 = por %p1624_p5, %p1623_p4 }
   0xe   :  { %p1626_p7 = pnand %p1625_p6, %p1619_p3 }
  0x10   :  { %1629 = shalt.err (!%p1626_p7)
}
  0x11   :  { %s1681_s22 = smov 256   ;;  %s1682_s23 = smov 16  }
  0x12   :  { %22 = dma.hbm_to_vmem [thread:$0]  %s1777_s0, 1024, %s17_s13, [#allocation3], %s1681_s22, %s1681_s22, %s1682_s23  }
  0x13   :  { %s1683_s26 = smov [#allocation5]   ;;  %s1630_s30 = scalar_lea.hbm %s1778_s1, 16384 }
  0x14   :  { %s28_s27 = sshll.u32 %s1683_s26, 4  ;;  %p1631_p8 = scmp.ne.s32.totalorder %s1778_s1, %s1630_s30  ;;  %s29_s27 = int_to_ptr.vmem [resolvable:$true] %s28_s27 }
  0x15   :  { %p1634_p9 = scmp.lt.u32.totalorder %s1630_s30, %s1778_s1 }
  0x17   :  { %p1636_p10 = pnand %p1634_p9, %p1631_p8 }
  0x19   :  { %1639 = shalt.err (!%p1636_p10)
}
  0x1a   :  { %s1640_s8 = scalar_lea.vmem %s29_s27, 16384  ;;  %p1645_p12 = scmp.lt.s32.totalorder %s29_s27, %s29_s27 }
  0x1b   :  { %p1641_p11 = scmp.ne.s32.totalorder %s29_s27, %s1640_s8  ;;  %p1646_p13 = scmp.lt.s32.totalorder %s1640_s8, %s1640_s8 }
  0x1d   :  { %p1647_p0 = por %p1646_p13, %p1645_p12 }
  0x1f   :  { %p1648_p1 = pnand %p1647_p0, %p1641_p11 }
  0x21   :  { %1651 = shalt.err (!%p1648_p1)
}
  0x22   :  { %34 = dma.hbm_to_vmem [thread:$0]  %s1778_s1, 16384, %s29_s27, [#allocation6], %s1681_s22, %s1681_s22, %s1682_s23  }
  0x23   :  { %1674 = dma.done.wait [#allocation3], 1024  }
  0x24   :  { %1675 = vsyncadd [#allocation3], 4294966272 }
  0x25   :  { %1676 = dma.done.wait [#allocation6], 16384  }
  0x26   :  { %1677 = vsyncadd [#allocation6], 4294950912  ;;  %v1404_v0 = vld [vmem:[#allocation5 + $0x4] ss:$16 sps:$4 sm:$0xff]   ;;  %v1406_v1 = vld [vmem:[#allocation5 + $0xc] ss:$16 sps:$4 sm:$0xff]  }
  0x27   :  { %881 = vmatprep.subr.bf16.mxu0 %v1404_v0  ;;  %v1408_v2 = vld [vmem:[#allocation5] ss:$16 sps:$4 sm:$0xff]   ;;  %v1409_v3 = vld [vmem:[#allocation5 + $0x8] ss:$16 sps:$4 sm:$0xff]   ;;  %987 = vmatprep.subr.bf16.mxu1 %v1406_v1  ;;  %v1410_v4 = vld [vmem:[#allocation5 + $0x24] ss:$16 sps:$4 sm:$0xff]  }
  0x28   :  { %882 = vmatpush1.bf16.msra.mxu0 %v1408_v2  ;;  %988 = vmatpush1.bf16.msra.mxu1 %v1409_v3  ;;  %v1412_v5 = vld [vmem:[#allocation5 + $0x2c] ss:$16 sps:$4 sm:$0xff]   ;;  %v1414_v6 = vld [vmem:[#allocation5 + $0x20] ss:$16 sps:$4 sm:$0xff]   ;;  %v1415_v7 = vld [vmem:[#allocation5 + $0x28] ss:$16 sps:$4 sm:$0xff]  }
  0x29   :  { %883 = vmatprep.subr.bf16.mxu0 %v1410_v4  ;;  %989 = vmatprep.subr.bf16.mxu1 %v1412_v5  ;;  %v1416_v8 = vld [vmem:[#allocation5 + $0x44] ss:$16 sps:$4 sm:$0xff]   ;;  %v1418_v9 = vld [vmem:[#allocation5 + $0x4c] ss:$16 sps:$4 sm:$0xff]   ;;  %v1420_v10 = vld [vmem:[#allocation5 + $0x40] ss:$16 sps:$4 sm:$0xff]  }
  0x2a   :  { %v1421_v11 = vld [vmem:[#allocation5 + $0x48] ss:$16 sps:$4 sm:$0xff]   ;;  %v1422_v12 = vld [vmem:[#allocation5 + $0x64] ss:$16 sps:$4 sm:$0xff]   ;;  %v1424_v13 = vld [vmem:[#allocation5 + $0x6c] ss:$16 sps:$4 sm:$0xff]  }
  0x2b   :  { %v1426_v14 = vld [vmem:[#allocation5 + $0x60] ss:$16 sps:$4 sm:$0xff]   ;;  %v1427_v15 = vld [vmem:[#allocation5 + $0x68] ss:$16 sps:$4 sm:$0xff]   ;;  %v1428_v16 = vld [vmem:[#allocation5 + $0x84] ss:$16 sps:$4 sm:$0xff]  }
  0x2c   :  { %884 = vmatpush1.bf16.msra.mxu0 %v1414_v6  ;;  %990 = vmatpush1.bf16.msra.mxu1 %v1415_v7  ;;  %v1430_v17 = vld [vmem:[#allocation5 + $0x8c] ss:$16 sps:$4 sm:$0xff]   ;;  %v1432_v18 = vld [vmem:[#allocation5 + $0x80] ss:$16 sps:$4 sm:$0xff]   ;;  %v1433_v19 = vld [vmem:[#allocation5 + $0x88] ss:$16 sps:$4 sm:$0xff]  }
  0x2d   :  { %885 = vmatprep.subr.bf16.mxu0 %v1416_v8  ;;  %991 = vmatprep.subr.bf16.mxu1 %v1418_v9  ;;  %v1434_v20 = vld [vmem:[#allocation5 + $0xa4] ss:$16 sps:$4 sm:$0xff]   ;;  %v1436_v21 = vld [vmem:[#allocation5 + $0xac] ss:$16 sps:$4 sm:$0xff]   ;;  %v1438_v22 = vld [vmem:[#allocation5 + $0xa0] ss:$16 sps:$4 sm:$0xff]  }
  0x2e   :  { %v1439_v23 = vld [vmem:[#allocation5 + $0xa8] ss:$16 sps:$4 sm:$0xff]   ;;  %v1440_v24 = vld [vmem:[#allocation5 + $0xc4] ss:$16 sps:$4 sm:$0xff]   ;;  %v1442_v25 = vld [vmem:[#allocation5 + $0xcc] ss:$16 sps:$4 sm:$0xff]  }
  0x2f   :  { %v1444_v26 = vld [vmem:[#allocation5 + $0xc0] ss:$16 sps:$4 sm:$0xff]   ;;  %v1445_v27 = vld [vmem:[#allocation5 + $0xc8] ss:$16 sps:$4 sm:$0xff]   ;;  %v1446_v28 = vld [vmem:[#allocation5 + $0xe4] ss:$16 sps:$4 sm:$0xff]  }
  0x30   :  { %886 = vmatpush1.bf16.msra.mxu0 %v1420_v10  ;;  %992 = vmatpush1.bf16.msra.mxu1 %v1421_v11  ;;  %v1448_v29 = vld [vmem:[#allocation5 + $0xec] ss:$16 sps:$4 sm:$0xff]   ;;  %v1450_v30 = vld [vmem:[#allocation5 + $0xe0] ss:$16 sps:$4 sm:$0xff]   ;;  %v1451_v31 = vld [vmem:[#allocation5 + $0xe8] ss:$16 sps:$4 sm:$0xff]  }
  0x31   :  { %887 = vmatprep.subr.bf16.mxu0 %v1422_v12  ;;  %993 = vmatprep.subr.bf16.mxu1 %v1424_v13  ;;  %v1452_v32 = vld [vmem:[#allocation5 + $0x104] ss:$16 sps:$4 sm:$0xff]   ;;  %v1454_v33 = vld [vmem:[#allocation5 + $0x10c] ss:$16 sps:$4 sm:$0xff]   ;;  %v1456_v34 = vld [vmem:[#allocation5 + $0x100] ss:$16 sps:$4 sm:$0xff]  }
  0x32   :  { %v1457_v35 = vld [vmem:[#allocation5 + $0x108] ss:$16 sps:$4 sm:$0xff]   ;;  %v1458_v36 = vld [vmem:[#allocation5 + $0x124] ss:$16 sps:$4 sm:$0xff]   ;;  %v1460_v37 = vld [vmem:[#allocation5 + $0x12c] ss:$16 sps:$4 sm:$0xff]  }
  0x33   :  { %v1462_v38 = vld [vmem:[#allocation5 + $0x120] ss:$16 sps:$4 sm:$0xff]   ;;  %v1463_v39 = vld [vmem:[#allocation5 + $0x128] ss:$16 sps:$4 sm:$0xff]   ;;  %v1464_v40 = vld [vmem:[#allocation5 + $0x144] ss:$16 sps:$4 sm:$0xff]  }
  0x34   :  { %888 = vmatpush1.bf16.msra.mxu0 %v1426_v14  ;;  %994 = vmatpush1.bf16.msra.mxu1 %v1427_v15  ;;  %v1466_v41 = vld [vmem:[#allocation5 + $0x14c] ss:$16 sps:$4 sm:$0xff]   ;;  %v1468_v42 = vld [vmem:[#allocation5 + $0x140] ss:$16 sps:$4 sm:$0xff]   ;;  %v1469_v43 = vld [vmem:[#allocation5 + $0x148] ss:$16 sps:$4 sm:$0xff]  }
  0x35   :  { %889 = vmatprep.subr.bf16.mxu0 %v1428_v16  ;;  %995 = vmatprep.subr.bf16.mxu1 %v1430_v17  ;;  %v1470_v44 = vld [vmem:[#allocation5 + $0x164] ss:$16 sps:$4 sm:$0xff]   ;;  %v1472_v45 = vld [vmem:[#allocation5 + $0x16c] ss:$16 sps:$4 sm:$0xff]   ;;  %v1474_v46 = vld [vmem:[#allocation5 + $0x160] ss:$16 sps:$4 sm:$0xff]  }
  0x36   :  { %v1475_v47 = vld [vmem:[#allocation5 + $0x168] ss:$16 sps:$4 sm:$0xff]   ;;  %v1502_v48 = vld [vmem:[#allocation2 + $0x4] ss:$16 sps:$4 sm:$0xff]   ;;  %v1478_v50 = vld [vmem:[#allocation5 + $0x18c] ss:$16 sps:$4 sm:$0xff]  }
  0x37   :  { %v1476_v49 = vld [vmem:[#allocation5 + $0x184] ss:$16 sps:$4 sm:$0xff]   ;;  %913 = vmatprep.mubr.bf16.mxu0 %v1502_v48  ;;  %1019 = vmatprep.mubr.bf16.mxu1 %v1502_v48  ;;  %v1480_v51 = vld [vmem:[#allocation5 + $0x180] ss:$16 sps:$4 sm:$0xff]   ;;  %v1481_v52 = vld [vmem:[#allocation5 + $0x188] ss:$16 sps:$4 sm:$0xff]  }
  0x38   :  { %890 = vmatpush1.bf16.msra.mxu0 %v1432_v18  ;;  %996 = vmatpush1.bf16.msra.mxu1 %v1433_v19  ;;  %v1482_v53 = vld [vmem:[#allocation5 + $0x1a4] ss:$16 sps:$4 sm:$0xff]   ;;  %v1484_v54 = vld [vmem:[#allocation5 + $0x1ac] ss:$16 sps:$4 sm:$0xff]   ;;  %v1486_v55 = vld [vmem:[#allocation5 + $0x1a0] ss:$16 sps:$4 sm:$0xff]  }
  0x39   :  { %891 = vmatprep.subr.bf16.mxu0 %v1434_v20  ;;  %997 = vmatprep.subr.bf16.mxu1 %v1436_v21  ;;  %v1487_v56 = vld [vmem:[#allocation5 + $0x1a8] ss:$16 sps:$4 sm:$0xff]   ;;  %v1488_v57 = vld [vmem:[#allocation5 + $0x1c4] ss:$16 sps:$4 sm:$0xff]   ;;  %v1490_v58 = vld [vmem:[#allocation5 + $0x1cc] ss:$16 sps:$4 sm:$0xff]  }
  0x3a   :  { %v1492_v59 = vld [vmem:[#allocation5 + $0x1c0] ss:$16 sps:$4 sm:$0xff]   ;;  %v1493_v60 = vld [vmem:[#allocation5 + $0x1c8] ss:$16 sps:$4 sm:$0xff]   ;;  %v1494_v61 = vld [vmem:[#allocation5 + $0x1e4] ss:$16 sps:$4 sm:$0xff]  }
  0x3b   :  { %v1496_v62 = vld [vmem:[#allocation5 + $0x1ec] ss:$16 sps:$4 sm:$0xff]   ;;  %v1498_v63 = vld [vmem:[#allocation5 + $0x1e0] ss:$16 sps:$4 sm:$0xff]   ;;  %v1499_v0 = vld [vmem:[#allocation5 + $0x1e8] ss:$16 sps:$4 sm:$0xff]  }
  0x3c   :  { %892 = vmatpush1.bf16.msra.mxu0 %v1438_v22  ;;  %998 = vmatpush1.bf16.msra.mxu1 %v1439_v23  ;;  %v1505_v1 = vld [vmem:[#allocation5 + $0x204] ss:$16 sps:$4 sm:$0xff]   ;;  %v1508_v2 = vld [vmem:[#allocation5 + $0x20c] ss:$16 sps:$4 sm:$0xff]   ;;  %v1500_v3 = vld [vmem:[#allocation2] ss:$16 sps:$4 sm:$0xff]  }
  0x3d   :  { %893 = vmatprep.subr.bf16.mxu0 %v1440_v24  ;;  %999 = vmatprep.subr.bf16.mxu1 %v1442_v25  ;;  %v1503_v4 = vld [vmem:[#allocation5 + $0x200] ss:$16 sps:$4 sm:$0xff]   ;;  %v1506_v5 = vld [vmem:[#allocation5 + $0x208] ss:$16 sps:$4 sm:$0xff]   ;;  %v1511_v6 = vld [vmem:[#allocation5 + $0x224] ss:$16 sps:$4 sm:$0xff]  }
  0x3e   :  { %v1514_v7 = vld [vmem:[#allocation5 + $0x22c] ss:$16 sps:$4 sm:$0xff]   ;;  %v1509_v8 = vld [vmem:[#allocation5 + $0x220] ss:$16 sps:$4 sm:$0xff]   ;;  %v1512_v9 = vld [vmem:[#allocation5 + $0x228] ss:$16 sps:$4 sm:$0xff]  }
  0x3f   :  { %v1517_v10 = vld [vmem:[#allocation5 + $0x244] ss:$16 sps:$4 sm:$0xff]   ;;  %v1520_v11 = vld [vmem:[#allocation5 + $0x24c] ss:$16 sps:$4 sm:$0xff]   ;;  %v1515_v12 = vld [vmem:[#allocation5 + $0x240] ss:$16 sps:$4 sm:$0xff]  }
  0x40   :  { %894 = vmatpush1.bf16.msra.mxu0 %v1444_v26  ;;  %1000 = vmatpush1.bf16.msra.mxu1 %v1445_v27  ;;  %v1518_v13 = vld [vmem:[#allocation5 + $0x248] ss:$16 sps:$4 sm:$0xff]   ;;  %v1523_v14 = vld [vmem:[#allocation5 + $0x264] ss:$16 sps:$4 sm:$0xff]   ;;  %v1526_v15 = vld [vmem:[#allocation5 + $0x26c] ss:$16 sps:$4 sm:$0xff]  }
  0x41   :  { %895 = vmatprep.subr.bf16.mxu0 %v1446_v28  ;;  %1001 = vmatprep.subr.bf16.mxu1 %v1448_v29  ;;  %v1521_v16 = vld [vmem:[#allocation5 + $0x260] ss:$16 sps:$4 sm:$0xff]   ;;  %v1524_v17 = vld [vmem:[#allocation5 + $0x268] ss:$16 sps:$4 sm:$0xff]   ;;  %v1529_v18 = vld [vmem:[#allocation5 + $0x284] ss:$16 sps:$4 sm:$0xff]  }
  0x42   :  { %v1532_v19 = vld [vmem:[#allocation5 + $0x28c] ss:$16 sps:$4 sm:$0xff]   ;;  %v1527_v20 = vld [vmem:[#allocation5 + $0x280] ss:$16 sps:$4 sm:$0xff]   ;;  %v1530_v21 = vld [vmem:[#allocation5 + $0x288] ss:$16 sps:$4 sm:$0xff]  }
  0x43   :  { %v1535_v22 = vld [vmem:[#allocation5 + $0x2a4] ss:$16 sps:$4 sm:$0xff]   ;;  %v1538_v23 = vld [vmem:[#allocation5 + $0x2ac] ss:$16 sps:$4 sm:$0xff]   ;;  %v1533_v24 = vld [vmem:[#allocation5 + $0x2a0] ss:$16 sps:$4 sm:$0xff]  }
  0x44   :  { %896 = vmatpush1.bf16.msra.mxu0 %v1450_v30  ;;  %1002 = vmatpush1.bf16.msra.mxu1 %v1451_v31  ;;  %v1587_v25 = vld [vmem:[#allocation2 + $0x24] ss:$16 sps:$4 sm:$0xff]   ;;  %v1536_v26 = vld [vmem:[#allocation5 + $0x2a8] ss:$16 sps:$4 sm:$0xff]   ;;  %v1589_v27 = vld [vmem:[#allocation2 + $0x20] ss:$16 sps:$4 sm:$0xff]  }
  0x45   :  { %897 = vmatprep.subr.bf16.mxu0 %v1452_v32  ;;  %1003 = vmatprep.subr.bf16.mxu1 %v1454_v33  ;;  %v1541_v28 = vld [vmem:[#allocation5 + $0x2c4] ss:$16 sps:$4 sm:$0xff]   ;;  %v1544_v29 = vld [vmem:[#allocation5 + $0x2cc] ss:$16 sps:$4 sm:$0xff]   ;;  %v1539_v30 = vld [vmem:[#allocation5 + $0x2c0] ss:$16 sps:$4 sm:$0xff]  }
  0x46   :  { %v1542_v31 = vld [vmem:[#allocation5 + $0x2c8] ss:$16 sps:$4 sm:$0xff]   ;;  %v1547_v32 = vld [vmem:[#allocation5 + $0x2e4] ss:$16 sps:$4 sm:$0xff]   ;;  %v1550_v33 = vld [vmem:[#allocation5 + $0x2ec] ss:$16 sps:$4 sm:$0xff]  }
  0x47   :  { %v1566_v48 = vld [vmem:[#allocation5 + $0x348] ss:$16 sps:$4 sm:$0xff]  }
  0x48   :  { %898 = vmatpush1.bf16.msra.mxu0 %v1456_v34  ;;  %1004 = vmatpush1.bf16.msra.mxu1 %v1457_v35  ;;  %v1604_v34 = vld [vmem:[#allocation2 + $0xc] ss:$16 sps:$4 sm:$0xff]   ;;  %v1545_v35 = vld [vmem:[#allocation5 + $0x2e0] ss:$16 sps:$4 sm:$0xff]  }
  0x49   :  { %899 = vmatprep.subr.bf16.mxu0 %v1458_v36  ;;  %1005 = vmatprep.subr.bf16.mxu1 %v1460_v37  ;;  %v1548_v36 = vld [vmem:[#allocation5 + $0x2e8] ss:$16 sps:$4 sm:$0xff]   ;;  %v1553_v37 = vld [vmem:[#allocation5 + $0x304] ss:$16 sps:$4 sm:$0xff]  }
  0x4c   :  { %900 = vmatpush1.bf16.msra.mxu0 %v1462_v38  ;;  %1006 = vmatpush1.bf16.msra.mxu1 %v1463_v39  ;;  %v1556_v38 = vld [vmem:[#allocation5 + $0x30c] ss:$16 sps:$4 sm:$0xff]   ;;  %v1551_v39 = vld [vmem:[#allocation5 + $0x300] ss:$16 sps:$4 sm:$0xff]  }
  0x4d   :  { %901 = vmatprep.subr.bf16.mxu0 %v1464_v40  ;;  %1007 = vmatprep.subr.bf16.mxu1 %v1466_v41  ;;  %v1554_v40 = vld [vmem:[#allocation5 + $0x308] ss:$16 sps:$4 sm:$0xff]   ;;  %v1559_v41 = vld [vmem:[#allocation5 + $0x324] ss:$16 sps:$4 sm:$0xff]  }
  0x50   :  { %902 = vmatpush1.bf16.msra.mxu0 %v1468_v42  ;;  %1008 = vmatpush1.bf16.msra.mxu1 %v1469_v43  ;;  %v1562_v42 = vld [vmem:[#allocation5 + $0x32c] ss:$16 sps:$4 sm:$0xff]   ;;  %v1557_v43 = vld [vmem:[#allocation5 + $0x320] ss:$16 sps:$4 sm:$0xff]  }
  0x51   :  { %903 = vmatprep.subr.bf16.mxu0 %v1470_v44  ;;  %1009 = vmatprep.subr.bf16.mxu1 %v1472_v45  ;;  %v1560_v44 = vld [vmem:[#allocation5 + $0x328] ss:$16 sps:$4 sm:$0xff]   ;;  %v1565_v45 = vld [vmem:[#allocation5 + $0x344] ss:$16 sps:$4 sm:$0xff]  }
  0x54   :  { %904 = vmatpush1.bf16.msra.mxu0 %v1474_v46  ;;  %1010 = vmatpush1.bf16.msra.mxu1 %v1475_v47  ;;  %v1568_v46 = vld [vmem:[#allocation5 + $0x34c] ss:$16 sps:$4 sm:$0xff]   ;;  %v1563_v47 = vld [vmem:[#allocation5 + $0x340] ss:$16 sps:$4 sm:$0xff]  }
  0x55   :  { %905 = vmatprep.subr.bf16.mxu0 %v1476_v49  ;;  %1011 = vmatprep.subr.bf16.mxu1 %v1478_v50  ;;  %v1571_v49 = vld [vmem:[#allocation5 + $0x364] ss:$16 sps:$4 sm:$0xff]   ;;  %v1574_v50 = vld [vmem:[#allocation5 + $0x36c] ss:$16 sps:$4 sm:$0xff]  }
  0x58   :  { %906 = vmatpush1.bf16.msra.mxu0 %v1480_v51  ;;  %1012 = vmatpush1.bf16.msra.mxu1 %v1481_v52  ;;  %v1569_v51 = vld [vmem:[#allocation5 + $0x360] ss:$16 sps:$4 sm:$0xff]   ;;  %v1572_v52 = vld [vmem:[#allocation5 + $0x368] ss:$16 sps:$4 sm:$0xff]  }
  0x59   :  { %907 = vmatprep.subr.bf16.mxu0 %v1482_v53  ;;  %1013 = vmatprep.subr.bf16.mxu1 %v1484_v54  ;;  %v1577_v53 = vld [vmem:[#allocation5 + $0x384] ss:$16 sps:$4 sm:$0xff]   ;;  %v1580_v54 = vld [vmem:[#allocation5 + $0x38c] ss:$16 sps:$4 sm:$0xff]  }
  0x5c   :  { %908 = vmatpush1.bf16.msra.mxu0 %v1486_v55  ;;  %1014 = vmatpush1.bf16.msra.mxu1 %v1487_v56  ;;  %v1575_v55 = vld [vmem:[#allocation5 + $0x380] ss:$16 sps:$4 sm:$0xff]   ;;  %v1578_v56 = vld [vmem:[#allocation5 + $0x388] ss:$16 sps:$4 sm:$0xff]  }
  0x5d   :  { %909 = vmatprep.subr.bf16.mxu0 %v1488_v57  ;;  %1015 = vmatprep.subr.bf16.mxu1 %v1490_v58  ;;  %v1583_v57 = vld [vmem:[#allocation5 + $0x3a4] ss:$16 sps:$4 sm:$0xff]   ;;  %v1586_v58 = vld [vmem:[#allocation5 + $0x3ac] ss:$16 sps:$4 sm:$0xff]  }
  0x60   :  { %910 = vmatpush1.bf16.msra.mxu0 %v1492_v59  ;;  %1016 = vmatpush1.bf16.msra.mxu1 %v1493_v60  ;;  %v1581_v59 = vld [vmem:[#allocation5 + $0x3a0] ss:$16 sps:$4 sm:$0xff]   ;;  %v1584_v60 = vld [vmem:[#allocation5 + $0x3a8] ss:$16 sps:$4 sm:$0xff]  }
  0x61   :  { %911 = vmatprep.subr.bf16.mxu0 %v1494_v61  ;;  %1017 = vmatprep.subr.bf16.mxu1 %v1496_v62  ;;  %v1592_v61 = vld [vmem:[#allocation5 + $0x3c4] ss:$16 sps:$4 sm:$0xff]   ;;  %v1595_v62 = vld [vmem:[#allocation5 + $0x3cc] ss:$16 sps:$4 sm:$0xff]  }
  0x64   :  { %912 = vmatpush1.bf16.msra.mxu0 %v1498_v63  ;;  %1018 = vmatpush1.bf16.msra.mxu1 %v1499_v0  ;;  %v1590_v63 = vld [vmem:[#allocation5 + $0x3c0] ss:$16 sps:$4 sm:$0xff]   ;;  %v1593_v0 = vld [vmem:[#allocation5 + $0x3c8] ss:$16 sps:$4 sm:$0xff]  }
  0x65   :  { %934 = vmatprep.subr.bf16.mxu0 %v1505_v1  ;;  %1040 = vmatprep.subr.bf16.mxu1 %v1508_v2  ;;  %v1598_v1 = vld [vmem:[#allocation5 + $0x3e4] ss:$16 sps:$4 sm:$0xff]   ;;  %v1601_v2 = vld [vmem:[#allocation5 + $0x3ec] ss:$16 sps:$4 sm:$0xff]  }
  0x67   :  { %914 = vmatmul.mubr.bf16.vlgmr.msra.gmra.mrb[0].mxu0 %v1500_v3  ;;  %1020 = vmatmul.mubr.bf16.vlgmr.msra.gmra.mrb[0].mxu1 %v1500_v3  ;;  %v1596_v3 = vld [vmem:[#allocation5 + $0x3e0] ss:$16 sps:$4 sm:$0xff]  }
  0x68   :  { %935 = vmatpush1.bf16.msra.mxu0 %v1503_v4  ;;  %1041 = vmatpush1.bf16.msra.mxu1 %v1506_v5  ;;  %v1599_v4 = vld [vmem:[#allocation5 + $0x3e8] ss:$16 sps:$4 sm:$0xff]  }
  0x69   :  { %936 = vmatprep.subr.bf16.mxu0 %v1511_v6  ;;  %1042 = vmatprep.subr.bf16.mxu1 %v1514_v7  ;;  %v1602_v5 = vld [vmem:[#allocation2 + $0x8] ss:$16 sps:$4 sm:$0xff]   ;;  %v1605_v6 = vld [vmem:[#allocation2 + $0x2c] ss:$16 sps:$4 sm:$0xff]  }
  0x6a   :  { %923 = vmatprep.mubr.bf16.mxu0 %v1587_v25  ;;  %1029 = vmatprep.mubr.bf16.mxu1 %v1587_v25  ;;  %v1607_v7 = vld [vmem:[#allocation2 + $0x28] ss:$16 sps:$4 sm:$0xff]  }
  0x6c   :  { %937 = vmatpush1.bf16.msra.mxu0 %v1509_v8  ;;  %1043 = vmatpush1.bf16.msra.mxu1 %v1512_v9  ;;  %v181_v8 = vlaneseq }
  0x6d   :  { %938 = vmatprep.subr.bf16.mxu0 %v1517_v10  ;;  %1044 = vmatprep.subr.bf16.mxu1 %v1520_v11 }
  0x6e   :  { %v182_v9 = vshrl.u32 %v181_v8, 7 }
  0x6f   :  { %924 = vmatmul.mubr.bf16.gmra.mrb[4].mxu0 %v1589_v27  ;;  %1030 = vmatmul.mubr.bf16.gmra.mrb[4].mxu1 %v1589_v27 }
  0x70   :  { %939 = vmatpush1.bf16.msra.mxu0 %v1515_v12  ;;  %1045 = vmatpush1.bf16.msra.mxu1 %v1518_v13  ;;  %v183_v10 = vsub.s32 0, %v182_v9  ;;  %v191_v11 = vsub.s32 2, %v182_v9  ;;  %v179_v12 = vld [vmem:[%s1779_s2] sm:$0xf]  ;;  %v187_v13 = vsub.s32 1, %v182_v9  ;;  %s1684_s2 = smov [#allocation7]  }
  0x71   :  { %940 = vmatprep.subr.bf16.mxu0 %v1523_v14  ;;  %1046 = vmatprep.subr.bf16.mxu1 %v1526_v15  ;;  %v195_v14 = vsub.s32 3, %v182_v9  ;;  %s1202_s11 = sshll.u32 %s1684_s2, 4  ;;  %s1203_s11 = int_to_ptr.vmem [resolvable:$true] %s1202_s11 }
  0x72   :  { %966 = vmatprep.mubr.bf16.mxu0 %v1604_v34  ;;  %1072 = vmatprep.mubr.bf16.mxu1 %v1604_v34  ;;  %v1738_v15 = vrot.slane %v179_v12, %v183_v10  ;;  %s1652_s12 = scalar_lea.vmem %s1203_s11, 1024  ;;  %p1657_p3 = scmp.lt.s32.totalorder %s1203_s11, %s1203_s11 }
  0x73   :  { %p1653_p2 = scmp.ne.s32.totalorder %s1203_s11, %s1652_s12  ;;  %p1658_p4 = scmp.lt.s32.totalorder %s1652_s12, %s1652_s12 }
  0x74   :  { %941 = vmatpush1.bf16.msra.mxu0 %v1521_v16  ;;  %1047 = vmatpush1.bf16.msra.mxu1 %v1524_v17  ;;  %v1740_v16 = vrot.slane %v179_v12, %v191_v11  ;;  %v1742_v17 = vrot.slane %v179_v12, %v187_v13 }
  0x75   :  { %942 = vmatprep.subr.bf16.mxu0 %v1529_v18  ;;  %1048 = vmatprep.subr.bf16.mxu1 %v1532_v19  ;;  %v1744_v18 = vrot.slane %v179_v12, %v195_v14  ;;  %p1659_p5 = por %p1658_p4, %p1657_p3 }
  0x77   :  { %p1660_p6 = pnand %p1659_p5, %p1653_p2 }
  0x78   :  { %943 = vmatpush1.bf16.msra.mxu0 %v1527_v20  ;;  %1049 = vmatpush1.bf16.msra.mxu1 %v1530_v21 }
  0x79   :  { %944 = vmatprep.subr.bf16.mxu0 %v1535_v22  ;;  %1050 = vmatprep.subr.bf16.mxu1 %v1538_v23 }
  0x7c   :  { %945 = vmatpush1.bf16.msra.mxu0 %v1533_v24  ;;  %1051 = vmatpush1.bf16.msra.mxu1 %v1536_v26 }
  0x7d   :  { %946 = vmatprep.subr.bf16.mxu0 %v1541_v28  ;;  %1052 = vmatprep.subr.bf16.mxu1 %v1544_v29 }
  0x80   :  { %947 = vmatpush1.bf16.msra.mxu0 %v1539_v30  ;;  %1053 = vmatpush1.bf16.msra.mxu1 %v1542_v31 }
  0x81   :  { %948 = vmatprep.subr.bf16.mxu0 %v1547_v32  ;;  %1054 = vmatprep.subr.bf16.mxu1 %v1550_v33 }
  0x84   :  { %949 = vmatpush1.bf16.msra.mxu0 %v1545_v35  ;;  %1055 = vmatpush1.bf16.msra.mxu1 %v1548_v36 }
  0x85   :  { %950 = vmatprep.subr.bf16.mxu0 %v1553_v37  ;;  %1056 = vmatprep.subr.bf16.mxu1 %v1556_v38 }
  0x88   :  { %951 = vmatpush1.bf16.msra.mxu0 %v1551_v39  ;;  %1057 = vmatpush1.bf16.msra.mxu1 %v1554_v40 }
  0x89   :  { %952 = vmatprep.subr.bf16.mxu0 %v1559_v41  ;;  %1058 = vmatprep.subr.bf16.mxu1 %v1562_v42 }
  0x8c   :  { %953 = vmatpush1.bf16.msra.mxu0 %v1557_v43  ;;  %1059 = vmatpush1.bf16.msra.mxu1 %v1560_v44 }
  0x8d   :  { %954 = vmatprep.subr.bf16.mxu0 %v1565_v45  ;;  %1060 = vmatprep.subr.bf16.mxu1 %v1568_v46 }
  0x90   :  { %955 = vmatpush1.bf16.msra.mxu0 %v1563_v47  ;;  %1061 = vmatpush1.bf16.msra.mxu1 %v1566_v48 }
  0x91   :  { %956 = vmatprep.subr.bf16.mxu0 %v1571_v49  ;;  %1062 = vmatprep.subr.bf16.mxu1 %v1574_v50 }
  0x94   :  { %957 = vmatpush1.bf16.msra.mxu0 %v1569_v51  ;;  %1063 = vmatpush1.bf16.msra.mxu1 %v1572_v52 }
  0x95   :  { %958 = vmatprep.subr.bf16.mxu0 %v1577_v53  ;;  %1064 = vmatprep.subr.bf16.mxu1 %v1580_v54 }
  0x98   :  { %959 = vmatpush1.bf16.msra.mxu0 %v1575_v55  ;;  %1065 = vmatpush1.bf16.msra.mxu1 %v1578_v56 }
  0x99   :  { %960 = vmatprep.subr.bf16.mxu0 %v1583_v57  ;;  %1066 = vmatprep.subr.bf16.mxu1 %v1586_v58 }
  0x9c   :  { %961 = vmatpush1.bf16.msra.mxu0 %v1581_v59  ;;  %1067 = vmatpush1.bf16.msra.mxu1 %v1584_v60 }
  0x9d   :  { %962 = vmatprep.subr.bf16.mxu0 %v1592_v61  ;;  %1068 = vmatprep.subr.bf16.mxu1 %v1595_v62 }
  0xa0   :  { %963 = vmatpush1.bf16.msra.mxu0 %v1590_v63  ;;  %1069 = vmatpush1.bf16.msra.mxu1 %v1593_v0 }
  0xa1   :  { %964 = vmatprep.subr.bf16.mxu0 %v1598_v1  ;;  %1070 = vmatprep.subr.bf16.mxu1 %v1601_v2 }
  0xa4   :  { %965 = vmatpush1.bf16.msra.mxu0 %v1596_v3  ;;  %1071 = vmatpush1.bf16.msra.mxu1 %v1599_v4 }
  0xa7   :  { %967 = vmatmul.mubr.bf16.vlgmr.msra.gmra.mrb[0].mxu0 %v1602_v5  ;;  %1073 = vmatmul.mubr.bf16.vlgmr.msra.gmra.mrb[0].mxu1 %v1602_v5 }
  0xa8   :  { %976 = vmatprep.mubr.bf16.mxu0 %v1605_v6  ;;  %1082 = vmatprep.mubr.bf16.mxu1 %v1605_v6 }
  0xaf   :  { %977 = vmatmul.mubr.bf16.gmra.mrb[4].mxu0 %v1607_v7  ;;  %1083 = vmatmul.mubr.bf16.gmra.mrb[4].mxu1 %v1607_v7 }
 0x17a   :  { %v968_v19 = vpop.f32.mrb[0].mxu0  ;;  %v1074_v20 = vpop.f32.mrb[0].mxu1 }
 0x17b   :  { %v1367_v21 = vadd.f32 %v968_v19, %v1738_v15  ;;  %v1375_v22 = vadd.f32 %v1074_v20, %v1740_v16  ;;  %v970_v23 = vpop.f32.mrb[1].mxu0  ;;  %v1076_v24 = vpop.f32.mrb[1].mxu1 }
 0x17c   :  { %v1368_v25 = vadd.f32 %v970_v23, %v1742_v17  ;;  %v1376_v26 = vadd.f32 %v1076_v24, %v1744_v18  ;;  %v972_v27 = vpop.f32.mrb[2].mxu0  ;;  %v1078_v28 = vpop.f32.mrb[2].mxu1 }
 0x17d   :  { %vm1093_vm0 = vcmp.ge.f32.partialorder %v1367_v21, 0.0  ;;  %v1109_v29 = vmul.f32 0.2, %v1367_v21  ;;  %vm1095_vm1 = vcmp.ge.f32.partialorder %v1375_v22, 0.0  ;;  %v1111_v30 = vmul.f32 0.2, %v1375_v22 }
 0x17e   :  { %vm1094_vm2 = vcmp.ge.f32.partialorder %v1368_v25, 0.0  ;;  %v1110_v31 = vmul.f32 0.2, %v1368_v25  ;;  %vm1096_vm3 = vcmp.ge.f32.partialorder %v1376_v26, 0.0  ;;  %v1112_v32 = vmul.f32 0.2, %v1376_v26 }
 0x17f   :  { %v1125_v33 = vsel %vm1093_vm0, %v1367_v21, %v1109_v29  ;;  %v1127_v34 = vsel %vm1095_vm1, %v1375_v22, %v1111_v30  ;;  %v1369_v35 = vadd.f32 %v972_v27, %v1738_v15  ;;  %v1377_v36 = vadd.f32 %v1078_v28, %v1740_v16  ;;  %v974_v37 = vpop.f32.mrb[3].mxu0  ;;  %v1080_v38 = vpop.f32.mrb[3].mxu1 }
 0x180   :  { %v1126_v39 = vsel %vm1094_vm2, %v1368_v25, %v1110_v31  ;;  %v1128_v40 = vsel %vm1096_vm3, %v1376_v26, %v1112_v32  ;;  %v1370_v41 = vadd.f32 %v974_v37, %v1742_v17  ;;  %v1378_v42 = vadd.f32 %v1080_v38, %v1744_v18 }
 0x181   :  { %v1359_v43 = vpack.c.bf16 %v1126_v39, %v1125_v33  ;;  %v1360_v44 = vpack.c.bf16 %v1128_v40, %v1127_v34  ;;  %vm1097_vm4 = vcmp.ge.f32.partialorder %v1369_v35, 0.0  ;;  %v1113_v45 = vmul.f32 0.2, %v1369_v35 }
 0x182   :  { %vm1099_vm5 = vcmp.ge.f32.partialorder %v1377_v36, 0.0  ;;  %v1115_v46 = vmul.f32 0.2, %v1377_v36  ;;  %vm1098_vm6 = vcmp.ge.f32.partialorder %v1370_v41, 0.0  ;;  %v1114_v47 = vmul.f32 0.2, %v1370_v41 }
 0x183   :  { %1189 = vst [vmem:[#allocation7] sm:$0xff] %v1359_v43  ;;  %1190 = vst [vmem:[#allocation7 + $0x8] sm:$0xff] %v1360_v44  ;;  %v1129_v48 = vsel %vm1097_vm4, %v1369_v35, %v1113_v45  ;;  %vm1100_vm7 = vcmp.ge.f32.partialorder %v1378_v42, 0.0  ;;  %v1116_v49 = vmul.f32 0.2, %v1378_v42  ;;  %v978_v50 = vpop.f32.mrb[4].mxu0 }
 0x184   :  { %v1084_v51 = vpop.f32.mrb[4].mxu1  ;;  %v1131_v52 = vsel %vm1099_vm5, %v1377_v36, %v1115_v46  ;;  %v1130_v53 = vsel %vm1098_vm6, %v1370_v41, %v1114_v47  ;;  %v1371_v54 = vadd.f32 %v978_v50, %v1738_v15  ;;  %v980_v56 = vpop.f32.mrb[5].mxu0 }
 0x185   :  { %v1379_v55 = vadd.f32 %v1084_v51, %v1740_v16  ;;  %v1086_v57 = vpop.f32.mrb[5].mxu1  ;;  %v1361_v58 = vpack.c.bf16 %v1130_v53, %v1129_v48  ;;  %v1132_v59 = vsel %vm1100_vm7, %v1378_v42, %v1116_v49  ;;  %v1372_v60 = vadd.f32 %v980_v56, %v1742_v17  ;;  %v982_v62 = vpop.f32.mrb[6].mxu0 }
 0x186   :  { %v1380_v61 = vadd.f32 %v1086_v57, %v1744_v18  ;;  %v1088_v63 = vpop.f32.mrb[6].mxu1  ;;  %v1362_v0 = vpack.c.bf16 %v1132_v59, %v1131_v52  ;;  %vm1101_vm8 = vcmp.ge.f32.partialorder %v1371_v54, 0.0  ;;  %v1117_v1 = vmul.f32 0.2, %v1371_v54  ;;  %v984_v2 = vpop.f32.mrb[7].mxu0 }
 0x187   :  { %vm1103_vm9 = vcmp.ge.f32.partialorder %v1379_v55, 0.0  ;;  %v1090_v3 = vpop.f32.mrb[7].mxu1  ;;  %1191 = vst [vmem:[#allocation7 + $0x10] sm:$0xff] %v1361_v58  ;;  %v1119_v4 = vmul.f32 0.2, %v1379_v55  ;;  %vm1102_vm10 = vcmp.ge.f32.partialorder %v1372_v60, 0.0  ;;  %v1373_v8 = vadd.f32 %v982_v62, %v1738_v15 }
 0x188   :  { %v1118_v5 = vmul.f32 0.2, %v1372_v60  ;;  %vm1104_vm11 = vcmp.ge.f32.partialorder %v1380_v61, 0.0  ;;  %1192 = vst [vmem:[#allocation7 + $0x18] sm:$0xff] %v1362_v0  ;;  %v1133_v6 = vsel %vm1101_vm8, %v1371_v54, %v1117_v1  ;;  %v1120_v7 = vmul.f32 0.2, %v1380_v61 }
 0x189   :  { %v1381_v9 = vadd.f32 %v1088_v63, %v1740_v16  ;;  %v1135_v10 = vsel %vm1103_vm9, %v1379_v55, %v1119_v4  ;;  %v1374_v12 = vadd.f32 %v984_v2, %v1742_v17  ;;  %v1382_v13 = vadd.f32 %v1090_v3, %v1744_v18 }
 0x18a   :  { %v1134_v11 = vsel %vm1102_vm10, %v1372_v60, %v1118_v5  ;;  %v1136_v19 = vsel %vm1104_vm11, %v1380_v61, %v1120_v7  ;;  %vm1105_vm12 = vcmp.ge.f32.partialorder %v1373_v8, 0.0  ;;  %v1121_v20 = vmul.f32 0.2, %v1373_v8 }
 0x18b   :  { %v1363_v14 = vpack.c.bf16 %v1134_v11, %v1133_v6  ;;  %v1364_v21 = vpack.c.bf16 %v1136_v19, %v1135_v10  ;;  %vm1107_vm13 = vcmp.ge.f32.partialorder %v1381_v9, 0.0  ;;  %v1123_v22 = vmul.f32 0.2, %v1381_v9 }
 0x18c   :  { %vm1106_vm14 = vcmp.ge.f32.partialorder %v1374_v12, 0.0  ;;  %v1137_v23 = vsel %vm1105_vm12, %v1373_v8, %v1121_v20  ;;  %v1122_v24 = vmul.f32 0.2, %v1374_v12  ;;  %vm1108_vm15 = vcmp.ge.f32.partialorder %v1382_v13, 0.0 }
 0x18d   :  { %1193 = vst [vmem:[#allocation7 + $0x20] sm:$0xff] %v1363_v14  ;;  %v1124_v15 = vmul.f32 0.2, %v1382_v13  ;;  %1194 = vst [vmem:[#allocation7 + $0x28] sm:$0xff] %v1364_v21  ;;  %v1139_v16 = vsel %vm1107_vm13, %v1381_v9, %v1123_v22 }
 0x18e   :  { %v1138_v17 = vsel %vm1106_vm14, %v1374_v12, %v1122_v24 }
 0x18f   :  { %v1140_v25 = vsel %vm1108_vm15, %v1382_v13, %v1124_v15  ;;  %v1365_v18 = vpack.c.bf16 %v1138_v17, %v1137_v23 }
 0x190   :  { %v1366_v26 = vpack.c.bf16 %v1140_v25, %v1139_v16 }
 0x191   :  { %1195 = vst [vmem:[#allocation7 + $0x30] sm:$0xff] %v1365_v18 }
 0x192   :  { %1196 = vst [vmem:[#allocation7 + $0x38] sm:$0xff] %v1366_v26 }
 0x193   :  { %1663 = shalt.err (!%p1660_p6)
}
 0x194   :  { %s1664_s15 = scalar_lea.hbm %s1780_s3, 1024 }
 0x195   :  { %p1665_p7 = scmp.ne.s32.totalorder %s1780_s3, %s1664_s15  ;;  %p1668_p8 = scmp.lt.u32.totalorder %s1664_s15, %s1780_s3 }
 0x197   :  { %p1670_p9 = pnand %p1668_p8, %p1665_p7 }
 0x199   :  { %1673 = shalt.err (!%p1670_p9)
}
 0x19a   :  { %1208 = dma.vmem_to_hbm [thread:$0]  %s1203_s11, 1024, %s1780_s3, [#allocation4], %s1681_s22, %s1681_s22, %s1682_s23  }
 0x19b   :  { %1678 = dma.done.wait [#allocation4], 1024  }
 0x19c   :  { %1679 = vsyncadd [#allocation4], 4294966272 }
 0x19d   :  { %1212 = vsyncpa [#allocation3], 1 }
 0x19e   :  { %1213 = vsyncpa [#allocation6], 1 }
 0x19f   :  { %1214 = vsyncpa [#allocation4], 1 }

</bundles_post_ra>
